<compile_context>
chip_gen: v7x
topology: tpu7x:2x2x1
jax: 0.10.0
libtpu: 0.0.40
codegen_flags: <defaults>
</compile_context>

<pallas_src>
import jax
import jax.numpy as jnp
from jax.experimental import pallas as pl
from jax.experimental.pallas import tpu as pltpu

NEG_SLOPE = 0.01   # nn.LeakyReLU default negative_slope
BN_EPS = 1e-5      # nn.BatchNorm1d default eps


def _round_up(a, b):
    return ((a + b - 1) // b) * b


def _stats_kernel(x_ref, w_ref, stats_ref):
    """Per-tile partial stats of z = x @ W (no bias): row sum and sum of squares.

    stats_ref: (2, C_out) block of the (n_tiles, 2, C_out) partial-stats output.
    Zero-padded tail rows contribute z == 0, so no masking/correction is needed.
    """
    z = jnp.dot(x_ref[...], w_ref[...], preferred_element_type=jnp.float32)
    stats_ref[0:1, :] = jnp.sum(z, axis=0, keepdims=True)
    stats_ref[1:2, :] = jnp.sum(z * z, axis=0, keepdims=True)


def _conv_bn_lrelu_kernel(x_ref, w_ref, scale_ref, shift_ref, o_ref):
    """Fused 1x1 conv (matmul) + affine (scale/shift) + LeakyReLU on one row tile."""
    z = jnp.dot(x_ref[...], w_ref[...], preferred_element_type=jnp.float32)
    z = z * scale_ref[...] + shift_ref[...]
    o_ref[...] = jnp.where(z >= 0, z, NEG_SLOPE * z).astype(o_ref.dtype)


def transformer_adapter(decoded, w, b, gamma, beta, *, bn=True, tm=1024,
                        matmul_dtype=jnp.float32):
    """decoded: (B, L, C_in); w: (C_out, C_in) (Conv1d weight squeezed); b/gamma/beta: (C_out,)."""
    B, L, Cin = decoded.shape
    Cout = w.shape[0]
    M = B * L

    # Row tile: big enough to amortize pipeline overhead / feed the MXU, capped at the
    # (8-aligned) row count. Tail rows are zero-padded, never asserted.
    # VMEM/step ~ 2*(tm*(Cin+Cout) + Cin*Cout)*4 B — well under v7x's 32 MiB scoped
    # default for transformer-sized channels; lower tm for very large C.
    tm = max(8, min(tm, _round_up(M, 8)))
    M_pad = _round_up(M, tm)
    n_tiles = M_pad // tm

    x = decoded.reshape(M, Cin).astype(jnp.float32)
    if M_pad != M:
        x = jnp.pad(x, ((0, M_pad - M), (0, 0)))
    x = x.astype(matmul_dtype)
    wt = w.T.astype(matmul_dtype)                       # (Cin, Cout)

    grid = (n_tiles,)
    parallel = pltpu.CompilerParams(dimension_semantics=("parallel",))

    if bn:
        # ---- kernel 1: per-tile partial sum / sumsq of x @ W (parallel grid) ----
        stats = pl.pallas_call(
            _stats_kernel,
            out_shape=jax.ShapeDtypeStruct((n_tiles, 2, Cout), jnp.float32),
            grid_spec=pltpu.PrefetchScalarGridSpec(
                num_scalar_prefetch=0,
                grid=grid,
                in_specs=[pl.BlockSpec((tm, Cin), lambda i: (i, 0)),
                          pl.BlockSpec((Cin, Cout), lambda i: (0, 0))],
                out_specs=pl.BlockSpec((None, 2, Cout), lambda i: (i, 0, 0)),
            ),
            compiler_params=parallel,
        )(x, wt)

        # Tiny tree reduction of partials + BN folding in plain JAX.
        sums = jnp.sum(stats, axis=0)                    # (2, Cout)
        inv_n = 1.0 / jnp.float32(M)                     # real (unpadded) row count
        mean_z = sums[0] * inv_n
        var = jnp.maximum(sums[1] * inv_n - mean_z * mean_z, 0.0)  # clamp f32 cancellation
        scale = gamma.astype(jnp.float32) * jax.lax.rsqrt(var + BN_EPS)
        # Train-mode BN subtracts the batch mean, so the conv bias cancels exactly.
        shift = beta.astype(jnp.float32) - mean_z * scale
    else:
        # MaybeModule(bn=False, ...) is identity: out = LeakyReLU(x @ W + b).
        scale = jnp.ones((Cout,), jnp.float32)
        shift = b.astype(jnp.float32)

    # ---- kernel 2: fused matmul + scale/shift + LeakyReLU (parallel grid) ----
    out = pl.pallas_call(
        _conv_bn_lrelu_kernel,
        out_shape=jax.ShapeDtypeStruct((M_pad, Cout), jnp.float32),
        grid_spec=pltpu.PrefetchScalarGridSpec(
            num_scalar_prefetch=0,
            grid=grid,
            in_specs=[pl.BlockSpec((tm, Cin), lambda i: (i, 0)),
                      pl.BlockSpec((Cin, Cout), lambda i: (0, 0)),
                      pl.BlockSpec((1, Cout), lambda i: (0, 0)),
                      pl.BlockSpec((1, Cout), lambda i: (0, 0))],
            out_specs=pl.BlockSpec((tm, Cout), lambda i: (i, 0)),
        ),
        compiler_params=parallel,
    )(x, wt, scale.reshape(1, Cout), shift.reshape(1, Cout))

    return out[:M].reshape(B, L, Cout)


def _reference(decoded, w, b, gamma, beta):
    """Pure-JAX reference matching the PyTorch train-mode forward."""
    y = jnp.einsum("blc,oc->blo", decoded, w) + b        # Conv1d, kernel_size=1
    mean = jnp.mean(y, axis=(0, 1))
    var = jnp.var(y, axis=(0, 1))                        # biased batch variance
    z = (y - mean) * (gamma / jnp.sqrt(var + BN_EPS)) + beta
    return jnp.where(z >= 0, z, NEG_SLOPE * z)


if __name__ == "__main__":
    B, L, Cin, Cout = 2, 8, 32, 32   # small shapes consistent with the module

    key = jax.random.PRNGKey(0)
    kx, kw, kb, kg, kbe = jax.random.split(key, 5)
    decoded = jax.random.normal(kx, (B, L, Cin), jnp.float32)
    w = jax.random.normal(kw, (Cout, Cin), jnp.float32) * 0.1   # Conv1d weight (Cout, Cin, 1) squeezed
    b = jax.random.normal(kb, (Cout,), jnp.float32) * 0.1       # Conv1d bias
    gamma = 1.0 + 0.1 * jax.random.normal(kg, (Cout,), jnp.float32)  # BN weight
    beta = 0.1 * jax.random.normal(kbe, (Cout,), jnp.float32)        # BN bias

    # bn=True path
    out = transformer_adapter(decoded, w, b, gamma, beta, bn=True)
    out = jax.block_until_ready(out)
    ref = _reference(decoded, w, b, gamma, beta)
    assert out.shape == (B, L, Cout)
    assert jnp.allclose(out, ref, atol=1e-4, rtol=1e-4), \
        float(jnp.max(jnp.abs(out - ref)))

    # bn=False (MaybeModule identity) path
    out_nb = jax.block_until_ready(
        transformer_adapter(decoded, w, b, gamma, beta, bn=False))
    y_nb = jnp.einsum("blc,oc->blo", decoded, w) + b
    ref_nb = jnp.where(y_nb >= 0, y_nb, NEG_SLOPE * y_nb)
    assert jnp.allclose(out_nb, ref_nb, atol=1e-4, rtol=1e-4)

    # Non-divisible row count (exercises zero-pad tail + multi-tile partial stats)
    dec2 = jax.random.normal(kx, (3, 7, Cin), jnp.float32)
    out2 = jax.block_until_ready(
        transformer_adapter(dec2, w, b, gamma, beta, bn=True, tm=8))
    ref2 = _reference(dec2, w, b, gamma, beta)
    assert jnp.allclose(out2, ref2, atol=1e-4, rtol=1e-4), \
        float(jnp.max(jnp.abs(out2 - ref2)))

    print("KERNEL_OK")
</pallas_src>

<mosaic_0001>
module attributes {stable_mosaic.version = 11 : i64} {
  func.func @_stats_kernel(%arg0: i32, %arg1: memref<16x32xf32, #tpu.memory_space<vmem>>, %arg2: memref<32x32xf32, #tpu.memory_space<vmem>>, %arg3: memref<1x2x32xf32, #tpu.memory_space<vmem>>) attributes {dimension_semantics = [#tpu.dimension_semantics<parallel>], iteration_bounds = array<i64: 1>, scalar_prefetch = 0 : i64, scratch_operands = 0 : i64, tpu.core_type = #tpu.core_type<tc>, window_params = [{transform_indices = @transform_0, window_bounds = array<i64: 16, 32>}, {pipeline_mode = #tpu.pipeline_mode<synchronous>, transform_indices = @transform_1, window_bounds = array<i64: 32, 32>}, {transform_indices = @transform_2, window_bounds = array<i64: 1, 2, 32>}]} {
    %c0 = arith.constant 0 : index
    %c0_0 = arith.constant 0 : index
    %0 = vector.load %arg1[%c0, %c0_0] : memref<16x32xf32, #tpu.memory_space<vmem>>, vector<16x32xf32>
    %c0_1 = arith.constant 0 : index
    %c0_2 = arith.constant 0 : index
    %1 = vector.load %arg2[%c0_1, %c0_2] : memref<32x32xf32, #tpu.memory_space<vmem>>, vector<32x32xf32>
    %cst = arith.constant dense<0.000000e+00> : vector<16x32xf32>
    %2 = tpu.matmul %0, %1, %cst {dimension_numbers = #tpu.dot_dimension_numbers<[1], [0], [0], [1], [0, 0, 1, 1], [], []>} : vector<16x32xf32>, vector<32x32xf32>, vector<16x32xf32> -> vector<16x32xf32>
    %cst_3 = arith.constant dense<0.000000e+00> : vector<32xf32>
    %3 = vector.multi_reduction <add>, %2, %cst_3 [0] : vector<16x32xf32> to vector<32xf32>
    %4 = vector.shape_cast %3 : vector<32xf32> to vector<1x32xf32>
    %c0_4 = arith.constant 0 : index
    %c0_5 = arith.constant 0 : index
    %c0_6 = arith.constant 0 : index
    %5 = vector.load %arg3[%c0_4, %c0_5, %c0_6] : memref<1x2x32xf32, #tpu.memory_space<vmem>>, vector<1x1x32xf32>
    %6 = vector.shape_cast %5 : vector<1x1x32xf32> to vector<1x32xf32>
    %7 = vector.shape_cast %4 : vector<1x32xf32> to vector<1x1x32xf32>
    tpu.vector_store %arg3[%c0_4, %c0_5, %c0_6], %7 {strides = array<i32>} : memref<1x2x32xf32, #tpu.memory_space<vmem>>, vector<1x1x32xf32>,
    %8 = arith.mulf %2, %2 : vector<16x32xf32>
    %cst_7 = arith.constant dense<0.000000e+00> : vector<32xf32>
    %9 = vector.multi_reduction <add>, %8, %cst_7 [0] : vector<16x32xf32> to vector<32xf32>
    %10 = vector.shape_cast %9 : vector<32xf32> to vector<1x32xf32>
    %c0_8 = arith.constant 0 : index
    %c1 = arith.constant 1 : index
    %c0_9 = arith.constant 0 : index
    %11 = vector.load %arg3[%c0_8, %c1, %c0_9] : memref<1x2x32xf32, #tpu.memory_space<vmem>>, vector<1x1x32xf32>
    %12 = vector.shape_cast %11 : vector<1x1x32xf32> to vector<1x32xf32>
    %13 = vector.shape_cast %10 : vector<1x32xf32> to vector<1x1x32xf32>
    tpu.vector_store %arg3[%c0_8, %c1, %c0_9], %13 {strides = array<i32>} : memref<1x2x32xf32, #tpu.memory_space<vmem>>, vector<1x1x32xf32>,
    return
  }
  func.func @transform_0(%arg0: i32) -> (i32, i32) {
    %c0_i32 = arith.constant 0 : i32
    %c0_i32_0 = arith.constant 0 : i32
    return %arg0, %c0_i32 : i32, i32
  }
  func.func @transform_1(%arg0: i32) -> (i32, i32) {
    %c0_i32 = arith.constant 0 : i32
    %c0_i32_0 = arith.constant 0 : i32
    %c0_i32_1 = arith.constant 0 : i32
    return %c0_i32, %c0_i32_0 : i32, i32
  }
  func.func @transform_2(%arg0: i32) -> (i32, i32, i32) {
    %c0_i32 = arith.constant 0 : i32
    %c0_i32_0 = arith.constant 0 : i32
    %c0_i32_1 = arith.constant 0 : i32
    return %arg0, %c0_i32, %c0_i32_0 : i32, i32, i32
  }
}

</mosaic_0001>

<bundles_post_ra>
// kernel: tpu_custom_call.1
= control target key start
LH: loop header
LB: loop body
LE: loop exit
PB: predicated region body
PF: predicated region fallthrough
CT: control target
= control target key end

     0   :  { %7 = vsyncpa [#allocation3], 0  ;;  %s333_s0 = inlined_call_operand.hbm [shape: f32[16,32], index: 0, kind: input, shape index: {}]   ;;  %s334_s1 = inlined_call_operand.hbm [shape: f32[32,32], index: 1, kind: input, shape index: {}]   ;;  %s335_s2 = inlined_call_operand.hbm [shape: f32[1,2,32], index: 2, kind: output, shape index: {}]  }
   0x1   :  { %8 = vsyncpa [#allocation6], 0 }
   0x2   :  { %9 = vsyncpa [#allocation4], 0  ;;  %s271_s9 = smov [#allocation2]   ;;  %s199_s13 = scalar_lea.hbm %s333_s0, 256 }
   0x3   :  { %s15_s10 = sshll.u32 %s271_s9, 4  ;;  %p200_p0 = scmp.ne.s32.totalorder %s333_s0, %s199_s13  ;;  %s16_s10 = int_to_ptr.vmem [resolvable:$true] %s15_s10 }
   0x4   :  { %p203_p1 = scmp.lt.u32.totalorder %s199_s13, %s333_s0 }
   0x6   :  { %p205_p2 = pnand %p203_p1, %p200_p0 }
   0x8   :  { %208 = shalt.err (!%p205_p2)
}
   0x9   :  { %s209_s18 = scalar_lea.vmem %s16_s10, 256  ;;  %p214_p4 = scmp.lt.s32.totalorder %s16_s10, %s16_s10 }
   0xa   :  { %p210_p3 = scmp.ne.s32.totalorder %s16_s10, %s209_s18  ;;  %p215_p5 = scmp.lt.s32.totalorder %s209_s18, %s209_s18 }
   0xc   :  { %p216_p6 = por %p215_p5, %p214_p4 }
   0xe   :  { %p217_p7 = pnand %p216_p6, %p210_p3 }
  0x10   :  { %220 = shalt.err (!%p217_p7)
}
  0x11   :  { %s272_s19 = smov 128   ;;  %s273_s20 = smov 8  }
  0x12   :  { %21 = dma.hbm_to_vmem [thread:$0]  %s333_s0, 256, %s16_s10, [#allocation3], %s272_s19, %s272_s19, %s273_s20  }
  0x13   :  { %s274_s23 = smov [#allocation5]   ;;  %s221_s27 = scalar_lea.hbm %s334_s1, 512 }
  0x14   :  { %s27_s24 = sshll.u32 %s274_s23, 4  ;;  %p222_p8 = scmp.ne.s32.totalorder %s334_s1, %s221_s27  ;;  %s28_s24 = int_to_ptr.vmem [resolvable:$true] %s27_s24 }
  0x15   :  { %p225_p9 = scmp.lt.u32.totalorder %s221_s27, %s334_s1 }
  0x17   :  { %p227_p10 = pnand %p225_p9, %p222_p8 }
  0x19   :  { %230 = shalt.err (!%p227_p10)
}
  0x1a   :  { %s231_s4 = scalar_lea.vmem %s28_s24, 512  ;;  %p236_p12 = scmp.lt.s32.totalorder %s28_s24, %s28_s24 }
  0x1b   :  { %p232_p11 = scmp.ne.s32.totalorder %s28_s24, %s231_s4  ;;  %p237_p13 = scmp.lt.s32.totalorder %s231_s4, %s231_s4 }
  0x1d   :  { %p238_p0 = por %p237_p13, %p236_p12 }
  0x1f   :  { %p239_p1 = pnand %p238_p0, %p232_p11 }
  0x21   :  { %242 = shalt.err (!%p239_p1)
}
  0x22   :  { %33 = dma.hbm_to_vmem [thread:$0]  %s334_s1, 512, %s28_s24, [#allocation6], %s272_s19, %s272_s19, %s273_s20  }
  0x23   :  { %265 = dma.done.wait [#allocation3], 256  }
  0x24   :  { %266 = vsyncadd [#allocation3], 4294967040 }
  0x25   :  { %267 = dma.done.wait [#allocation6], 512  }
  0x26   :  { %268 = vsyncadd [#allocation6], 4294966784  ;;  %vm46_vm0 = vcmask 261120   ;;  %v42_v0 = vld [vmem:[#allocation5] sm:$0xff]  ;;  %v43_v1 = vld [vmem:[#allocation5 + $0x8] sm:$0xff]  ;;  %vm137_vm1 = vcmask 253952  }
  0x27   :  { %v44_v2 = vld [vmem:[#allocation5 + $0x10] sm:$0xff]  ;;  %v186_v3 = vpack.c.bf16 %v43_v1, %v42_v0  ;;  %v45_v4 = vld [vmem:[#allocation5 + $0x18] sm:$0xff]  ;;  %s275_s1 = smov [#allocation7]  }
  0x28   :  { %v40_v5 = vld [vmem:[#allocation2] sm:$0xff]  ;;  %v190_v6 = vpack.c.bf16 %v45_v4, %v44_v2  ;;  %v41_v7 = vld [vmem:[#allocation2 + $0x8] sm:$0xff]  ;;  %s157_s6 = sshll.u32 %s275_s1, 4  ;;  %s158_s6 = int_to_ptr.vmem [resolvable:$true] %s157_s6 }
  0x29   :  { %183 = vmatprep.mubr.msk.f32.mxu0 %vm46_vm0, %v40_v5  ;;  %187 = vmatprep.subr.bf16.mxu0 %v186_v3  ;;  %s243_s7 = scalar_lea.vmem %s158_s6, 32  ;;  %p248_p3 = scmp.lt.s32.totalorder %s158_s6, %s158_s6 }
  0x2a   :  { %189 = vmatpush3.bf16.msra.mxu0 %v186_v3  ;;  %p244_p2 = scmp.ne.s32.totalorder %s158_s6, %s243_s7  ;;  %p249_p4 = scmp.lt.s32.totalorder %s243_s7, %s243_s7 }
  0x2b   :  { %191 = vmatprep.subr.bf16.mxu0 %v190_v6 }
  0x2c   :  { %p250_p5 = por %p249_p4, %p248_p3 }
  0x2e   :  { %193 = vmatpush3.bf16.msra.mxu0 %v190_v6  ;;  %p251_p6 = pnand %p250_p5, %p244_p2 }
  0x31   :  { %184 = vmatmul.mubr.msk.f32.vlgmr.msra.gmra.mrb[0].mxu0 %vm46_vm0, %v41_v7 }
 0x104   :  { %v185_v8 = vpop.f32.mrb[0].mxu0 }
 0x105   :  { %v129_v9 = vsel %vm46_vm0, %v185_v8, 0.0  ;;  %v140_v10 = vmul.f32 %v185_v8, %v185_v8  ;;  %v119_v11 = vpop.f32.mrb[1].mxu0 }
 0x106   :  { %v128_v12 = vsel %vm46_vm0, %v119_v11, 0.0  ;;  %v139_v13 = vmul.f32 %v119_v11, %v119_v11 }
 0x107   :  { %v142_v14 = vsel %vm46_vm0, %v140_v10, 0.0  ;;  %v130_v15 = vadd.f32 %v129_v9, %v128_v12 }
 0x108   :  { %v141_v16 = vsel %vm46_vm0, %v139_v13, 0.0 }
 0x109   :  { %v131_v17 = vrot.slane %v130_v15, 4  ;;  %v143_v18 = vadd.f32 %v142_v14, %v141_v16 }
 0x10b   :  { %v132_v19 = vadd.f32 %v131_v17, %v130_v15  ;;  %v144_v20 = vrot.slane %v143_v18, 4 }
 0x10d   :  { %v133_v21 = vrot.slane %v132_v19, 2  ;;  %v145_v22 = vadd.f32 %v144_v20, %v143_v18 }
 0x10f   :  { %v134_v23 = vadd.f32 %v133_v21, %v132_v19  ;;  %v146_v24 = vrot.slane %v145_v22, 2 }
 0x111   :  { %v135_v25 = vrot.slane %v134_v23, 1  ;;  %v147_v26 = vadd.f32 %v146_v24, %v145_v22 }
 0x113   :  { %v136_v27 = vadd.f32 %v135_v25, %v134_v23  ;;  %v148_v28 = vrot.slane %v147_v26, 1 }
 0x115   :  { %138 = vst.msk [vmem:[#allocation7] sm:$0x1] %vm137_vm1, %v136_v27  ;;  %v149_v29 = vadd.f32 %v148_v28, %v147_v26 }
 0x117   :  { %150 = vst.msk [vmem:[#allocation7 + $0x1] sm:$0x1] %vm137_vm1, %v149_v29 }
 0x118   :  { %254 = shalt.err (!%p251_p6)
}
 0x119   :  { %s255_s10 = scalar_lea.hbm %s335_s2, 32 }
 0x11a   :  { %p256_p7 = scmp.ne.s32.totalorder %s335_s2, %s255_s10  ;;  %p259_p8 = scmp.lt.u32.totalorder %s255_s10, %s335_s2 }
 0x11c   :  { %p261_p9 = pnand %p259_p8, %p256_p7 }
 0x11e   :  { %264 = shalt.err (!%p261_p9)
}
 0x11f   :  { %160 = dma.vmem_to_hbm [thread:$0]  %s158_s6, 32, %s335_s2, [#allocation4]  }
 0x120   :  { %269 = dma.done.wait [#allocation4], 32  }
 0x121   :  { %270 = vsyncadd [#allocation4], 4294967264 }
 0x122   :  { %164 = vsyncpa [#allocation3], 1 }
 0x123   :  { %165 = vsyncpa [#allocation6], 1 }
 0x124   :  { %166 = vsyncpa [#allocation4], 1 }

</bundles_post_ra>
